<compile_context>
chip_gen: v7x
topology: tpu7x:2x2x1
jax: 0.10.0
libtpu: 0.0.40
codegen_flags: <defaults>
</compile_context>

<pallas_src>
import functools

import jax
import jax.numpy as jnp
from jax.experimental import pallas as pl
from jax.experimental.pallas import tpu as pltpu


# ------------------------------ helpers -------------------------------------

def _tile_m(M, max_tile=512):
    """Largest row tile <= max_tile that evenly divides M (multiple of 8 when tiled)."""
    if M <= max_tile:
        return M
    start = max_tile - (max_tile % 8)
    for t in range(start, 7, -8):
        if M % t == 0:
            return t
    return M


def _layernorm(v, g, b, eps):
    # PyTorch LayerNorm semantics: biased variance, eps inside rsqrt.
    mean = jnp.mean(v, axis=-1, keepdims=True)
    c = v - mean
    var = jnp.mean(c * c, axis=-1, keepdims=True)
    return c * jax.lax.rsqrt(var + eps) * g + b


# ----------------------------- Pallas kernels ------------------------------

def _qkv_hash_kernel(x_ref, w_ref, b_ref, hm_ref, qkv_ref, proj_ref, *, H):
    # x:(tm, dh)  w:(dh, H+Hv)  b:(1, H+Hv)  hm:(H, nb/2)
    qkv = jnp.dot(x_ref[...], w_ref[...], preferred_element_type=jnp.float32) + b_ref[...]
    qkv_ref[...] = qkv
    # LSH hash projection fused here so qk never round-trips HBM for hashing.
    qk = qkv[:, :H]
    proj_ref[...] = jnp.dot(qk, hm_ref[...], preferred_element_type=jnp.float32)


def pallas_qkv_hash(x2, w_cat, b_cat, hash_matrix, H):
    """Fused [Wqk | Wv] projection + hash projection.

    x2:(M, dh) -> qkv:(M, H+Hv), proj:(M, nb/2)
    """
    M, dh = x2.shape
    HN = w_cat.shape[1]
    nbh = hash_matrix.shape[1]
    tm = _tile_m(M)
    grid = (M // tm,)
    return pl.pallas_call(
        functools.partial(_qkv_hash_kernel, H=H),
        out_shape=(jax.ShapeDtypeStruct((M, HN), jnp.float32),
                   jax.ShapeDtypeStruct((M, nbh), jnp.float32)),
        grid=grid,
        in_specs=[
            pl.BlockSpec((tm, dh), lambda i: (i, 0)),
            pl.BlockSpec((dh, HN), lambda i: (0, 0)),
            pl.BlockSpec((1, HN), lambda i: (0, 0)),
            pl.BlockSpec((H, nbh), lambda i: (0, 0)),
        ],
        out_specs=(pl.BlockSpec((tm, HN), lambda i: (i, 0)),
                   pl.BlockSpec((tm, nbh), lambda i: (i, 0))),
        compiler_params=pltpu.CompilerParams(dimension_semantics=("parallel",)),
    )(x2, w_cat, b_cat, hash_matrix)


def _bucket_attn_kernel(qkv_ref, o_ref, *, H, scale, penalty):
    # One step over ALL chunks: scores = (q q^T) * scale, diagonal additionally
    # scaled by 1/penalty (single multiplicative mask; matches scores/diag /sqrt(dqk)),
    # no softmax (matches the reference), out = scores @ v.
    x = qkv_ref[...]                     # (B, ch, H+Hv)
    q = x[:, :, :H]                      # (B, ch, H)
    v = x[:, :, H:]                      # (B, ch, Hv)
    s = jnp.einsum('bqd,bkd->bqk', q, q, preferred_element_type=jnp.float32)
    ch = s.shape[-1]
    row = jax.lax.broadcasted_iota(jnp.int32, (ch, ch), 0)
    col = jax.lax.broadcasted_iota(jnp.int32, (ch, ch), 1)
    mask = jnp.where(row == col, jnp.float32(scale / penalty), jnp.float32(scale))
    s = s * mask[None, :, :]
    o_ref[...] = jnp.einsum('bqk,bkd->bqd', s, v, preferred_element_type=jnp.float32)


def pallas_bucket_attention(qkv_b, H, dqk, penalty):
    """qkv_b:(B, ch, H+Hv) (LSH-sorted, chunked) -> attn:(B, ch, Hv), single grid step."""
    B, ch, HN = qkv_b.shape
    Hv = HN - H
    return pl.pallas_call(
        functools.partial(_bucket_attn_kernel, H=H,
                          scale=1.0 / (dqk ** 0.5), penalty=penalty),
        out_shape=jax.ShapeDtypeStruct((B, ch, Hv), jnp.float32),
        grid=(1,),
        in_specs=[pl.BlockSpec((B, ch, HN), lambda i: (0, 0, 0))],
        out_specs=pl.BlockSpec((B, ch, Hv), lambda i: (0, 0, 0)),
    )(qkv_b)


def _encoder_tail_kernel(attn_ref, x1_ref, x2_ref,
                         uw_ref, ub_ref, g1_ref, b1_ref,
                         f1w_ref, f1b_ref, f2w_ref, f2b_ref,
                         g2_ref, b2_ref,
                         wa_ref, wb_ref, cb1_ref, w2_ref, cb2_ref,
                         o_ref, *, eps):
    # unify linear
    unified = jnp.dot(attn_ref[...], uw_ref[...],
                      preferred_element_type=jnp.float32) + ub_ref[...]
    # residual + LayerNorm1
    y1 = _layernorm(x1_ref[...] + unified, g1_ref[...], b1_ref[...], eps)
    # FFN (ReLU between)
    h = jnp.maximum(jnp.dot(y1, f1w_ref[...],
                            preferred_element_type=jnp.float32) + f1b_ref[...], 0.0)
    ffout = jnp.dot(h, f2w_ref[...], preferred_element_type=jnp.float32) + f2b_ref[...]
    # residual + LayerNorm2
    y2 = _layernorm(x2_ref[...] + ffout, g2_ref[...], b2_ref[...], eps)
    # classifier head: cat(y1, y2) @ W1 == y1 @ Wa + y2 @ Wb (no concat materialized)
    h2 = (jnp.dot(y1, wa_ref[...], preferred_element_type=jnp.float32)
          + jnp.dot(y2, wb_ref[...], preferred_element_type=jnp.float32)
          + cb1_ref[...])
    h2 = jnp.maximum(h2, 0.0)
    out = jnp.dot(h2, w2_ref[...], preferred_element_type=jnp.float32) + cb2_ref[...]
    o_ref[...] = jax.nn.sigmoid(jnp.maximum(out, 0.0))


def pallas_encoder_tail_and_head(attn, x1, x2, p, eps=1e-5):
    """unify + add&norm1 + FFN + add&norm2 + classifier head in a single kernel."""
    M, dh = x1.shape
    Hv = attn.shape[1]
    F = p["eff1_w"].shape[1]
    L = p["off2_w"].shape[1]
    tm = _tile_m(M)
    grid = (M // tm,)

    def rows(c):
        return pl.BlockSpec((tm, c), lambda i: (i, 0))

    def full(r, c):
        return pl.BlockSpec((r, c), lambda i: (0, 0))

    return pl.pallas_call(
        functools.partial(_encoder_tail_kernel, eps=eps),
        out_shape=jax.ShapeDtypeStruct((M, L), jnp.float32),
        grid=grid,
        in_specs=[
            rows(Hv), rows(dh), rows(dh),
            full(Hv, dh), full(1, dh), full(1, dh), full(1, dh),
            full(dh, F), full(1, F), full(F, dh), full(1, dh),
            full(1, dh), full(1, dh),
            full(dh, dh), full(dh, dh), full(1, dh),
            full(dh, L), full(1, L),
        ],
        out_specs=rows(L),
        compiler_params=pltpu.CompilerParams(dimension_semantics=("parallel",)),
    )(attn, x1, x2,
      p["unify_w"], p["unify_b2"], p["norm1_g2"], p["norm1_b2"],
      p["eff1_w"], p["eff1_b2"], p["eff2_w"], p["eff2_b2"],
      p["norm2_g2"], p["norm2_b2"],
      p["off1_wa"], p["off1_wb"], p["off1_b2"], p["off2_w"], p["off2_b2"])


# ------------------------------ plain-JAX glue ------------------------------

def position_encoding(d, n, dmodel):
    pos = jnp.arange(n, dtype=jnp.float32)[:, None]                      # (n,1)
    power = jnp.arange(0, dmodel, 2, dtype=jnp.float32) / float(dmodel)  # (dmodel//2,)
    denom = jnp.power(10000.0, power)[None, :]
    ang = pos / denom                                                    # (n, dmodel//2)
    enc = jnp.zeros((n, dmodel), jnp.float32)
    enc = enc.at[:, 0::2].set(jnp.sin(ang))
    enc = enc.at[:, 1::2].set(jnp.cos(ang))
    return jnp.broadcast_to(enc[None], (d, n, dmodel))


# ------------------------------ model wrapper -------------------------------

class Config:
    dmodel = 32
    dqk = 8
    dv = 8
    heads = 2
    feedforward = 64
    vocab_size = 50
    num_buckets = 4
    num_bio_labels = 16
    attn_in_place_penalty = 100000.0


def init_params(cfg, key):
    ks = jax.random.split(key, 16)
    dh = cfg.dmodel // 2
    H = cfg.heads * cfg.dqk
    Hv = cfg.heads * cfg.dv
    s = 0.05

    def nrm(k, shape):
        return s * jax.random.normal(k, shape, jnp.float32)

    return {
        "embedding": nrm(ks[0], (cfg.vocab_size, cfg.dmodel)),
        # ReformerEncoder (weights stored transposed: (in, out))
        "Wqk_w": nrm(ks[1], (dh, H)), "Wqk_b": nrm(ks[2], (H,)),
        "Wv_w": nrm(ks[3], (dh, Hv)), "Wv_b": nrm(ks[4], (Hv,)),
        "unify_w": nrm(ks[5], (Hv, dh)), "unify_b": nrm(ks[6], (dh,)),
        "hashMatrix": jax.random.normal(ks[7], (H, cfg.num_buckets // 2), jnp.float32),
        "norm1_g": jnp.ones((dh,), jnp.float32), "norm1_b": jnp.zeros((dh,), jnp.float32),
        "eff1_w": nrm(ks[8], (dh, cfg.feedforward)), "eff1_b": nrm(ks[9], (cfg.feedforward,)),
        "eff2_w": nrm(ks[10], (cfg.feedforward, dh)), "eff2_b": nrm(ks[11], (dh,)),
        "norm2_g": jnp.ones((dh,), jnp.float32), "norm2_b": jnp.zeros((dh,), jnp.float32),
        # outer classifier head
        "off1_w": nrm(ks[12], (cfg.dmodel, dh)), "off1_b": nrm(ks[13], (dh,)),
        "off2_w": nrm(ks[14], (dh, cfg.num_bio_labels)), "off2_b": nrm(ks[15], (cfg.num_bio_labels,)),
        # NOTE: the reference defines self.norm = LayerNorm(num_bio_labels) but never
        # uses it in forward(), so it is intentionally omitted here.
    }


def genia_reformer2_forward(params, input_indices, cfg):
    UNK_IDX = 1
    d, n = input_indices.shape
    dh = cfg.dmodel // 2
    H = cfg.heads * cfg.dqk
    Hv = cfg.heads * cfg.dv

    # embedding + positional encoding (gather = glue)
    idx = jnp.where(input_indices >= cfg.vocab_size, UNK_IDX, input_indices)
    x = params["embedding"][idx] + position_encoding(d, n, cfg.dmodel)   # (d,n,dmodel)

    # ---- ReformerEncoder ----
    x1 = x[:, :, :dh].reshape(d * n, dh)
    x2 = x[:, :, dh:].reshape(d * n, dh)

    # fused Wqk/Wv projection + hash projection (Pallas call #1)
    w_cat = jnp.concatenate([params["Wqk_w"], params["Wv_w"]], axis=1)        # (dh, H+Hv)
    b_cat = jnp.concatenate([params["Wqk_b"], params["Wv_b"]]).reshape(1, -1)  # (1, H+Hv)
    qkv, proj = pallas_qkv_hash(x2, w_cat, b_cat, params["hashMatrix"], H)

    # LSH bucketing + sort + gather (data-dependent routing: plain JAX glue)
    # TODO(synk): for realistic n, gather rows inside the attention kernel via
    # PrefetchScalarGridSpec(sorted_idx) instead of materializing the sorted copy.
    hashes = jnp.argmax(jnp.concatenate([proj, -proj], axis=-1), axis=-1).reshape(d, n)
    sorted_idx = jnp.argsort(hashes, axis=-1)
    qkv_sorted = jnp.take_along_axis(qkv.reshape(d, n, H + Hv),
                                     sorted_idx[:, :, None], axis=1)

    ch = 2 * (n // cfg.num_buckets)
    nc = cfg.num_buckets // 2
    qkv_b = qkv_sorted.reshape(d * nc, ch, H + Hv)

    # bucketed attention, all chunks in one grid step (Pallas call #2)
    attn = pallas_bucket_attention(qkv_b, H, cfg.dqk, cfg.attn_in_place_penalty)
    attn = attn.reshape(d * n, Hv)      # NOTE: like the reference, NOT unsorted back

    # fused unify + add&norm1 + FFN + add&norm2 + classifier head (Pallas call #3)
    prepared = {
        "unify_w": params["unify_w"], "unify_b2": params["unify_b"].reshape(1, -1),
        "norm1_g2": params["norm1_g"].reshape(1, -1), "norm1_b2": params["norm1_b"].reshape(1, -1),
        "eff1_w": params["eff1_w"], "eff1_b2": params["eff1_b"].reshape(1, -1),
        "eff2_w": params["eff2_w"], "eff2_b2": params["eff2_b"].reshape(1, -1),
        "norm2_g2": params["norm2_g"].reshape(1, -1), "norm2_b2": params["norm2_b"].reshape(1, -1),
        "off1_wa": params["off1_w"][:dh], "off1_wb": params["off1_w"][dh:],
        "off1_b2": params["off1_b"].reshape(1, -1),
        "off2_w": params["off2_w"], "off2_b2": params["off2_b"].reshape(1, -1),
    }
    out = pallas_encoder_tail_and_head(attn, x1, x2, prepared)
    return out.reshape(d, n, cfg.num_bio_labels)


# ----------------------------------- main ------------------------------------

if __name__ == "__main__":
    cfg = Config()
    key = jax.random.PRNGKey(0)
    pkey, ikey = jax.random.split(key)

    params = init_params(cfg, pkey)

    d, n = 2, 16  # n must be a multiple of num_buckets
    # draw some indices >= vocab_size to exercise the UNK clamp
    input_indices = jax.random.randint(ikey, (d, n), 0, cfg.vocab_size + 5, dtype=jnp.int32)

    fwd = jax.jit(functools.partial(genia_reformer2_forward, cfg=cfg))
    out = fwd(params, input_indices)
    out = jax.block_until_ready(out)

    assert out.shape == (d, n, cfg.num_bio_labels), out.shape
    assert bool(jnp.all(jnp.isfinite(out)))
    print("KERNEL_OK")
</pallas_src>

<mosaic_0001>
module attributes {stable_mosaic.version = 11 : i64} {
  func.func @_qkv_hash_kernel(%arg0: i32, %arg1: memref<32x16xf32, #tpu.memory_space<vmem>>, %arg2: memref<16x32xf32, #tpu.memory_space<vmem>>, %arg3: memref<1x32xf32, #tpu.memory_space<vmem>>, %arg4: memref<16x2xf32, #tpu.memory_space<vmem>>, %arg5: memref<32x32xf32, #tpu.memory_space<vmem>>, %arg6: memref<32x2xf32, #tpu.memory_space<vmem>>) attributes {dimension_semantics = [#tpu.dimension_semantics<parallel>], iteration_bounds = array<i64: 1>, scalar_prefetch = 0 : i64, scratch_operands = 0 : i64, tpu.core_type = #tpu.core_type<tc>, window_params = [{transform_indices = @transform_0, window_bounds = array<i64: 32, 16>}, {pipeline_mode = #tpu.pipeline_mode<synchronous>, transform_indices = @transform_1, window_bounds = array<i64: 16, 32>}, {pipeline_mode = #tpu.pipeline_mode<synchronous>, transform_indices = @transform_2, window_bounds = array<i64: 1, 32>}, {pipeline_mode = #tpu.pipeline_mode<synchronous>, transform_indices = @transform_3, window_bounds = array<i64: 16, 2>}, {transform_indices = @transform_4, window_bounds = array<i64: 32, 32>}, {transform_indices = @transform_5, window_bounds = array<i64: 32, 2>}]} {
    %c0 = arith.constant 0 : index
    %c0_0 = arith.constant 0 : index
    %0 = vector.load %arg1[%c0, %c0_0] : memref<32x16xf32, #tpu.memory_space<vmem>>, vector<32x16xf32>
    %c0_1 = arith.constant 0 : index
    %c0_2 = arith.constant 0 : index
    %1 = vector.load %arg2[%c0_1, %c0_2] : memref<16x32xf32, #tpu.memory_space<vmem>>, vector<16x32xf32>
    %cst = arith.constant dense<0.000000e+00> : vector<32x32xf32>
    %2 = tpu.matmul %0, %1, %cst {dimension_numbers = #tpu.dot_dimension_numbers<[1], [0], [0], [1], [0, 0, 1, 1], [], []>} : vector<32x16xf32>, vector<16x32xf32>, vector<32x32xf32> -> vector<32x32xf32>
    %c0_3 = arith.constant 0 : index
    %c0_4 = arith.constant 0 : index
    %3 = vector.load %arg3[%c0_3, %c0_4] : memref<1x32xf32, #tpu.memory_space<vmem>>, vector<1x32xf32>
    %4 = vector.broadcast %3 : vector<1x32xf32> to vector<32x32xf32>
    %5 = arith.addf %2, %4 : vector<32x32xf32>
    %c0_5 = arith.constant 0 : index
    %c0_6 = arith.constant 0 : index
    %6 = vector.load %arg5[%c0_5, %c0_6] : memref<32x32xf32, #tpu.memory_space<vmem>>, vector<32x32xf32>
    tpu.vector_store %arg5[%c0_5, %c0_6], %5 {strides = array<i32>} : memref<32x32xf32, #tpu.memory_space<vmem>>, vector<32x32xf32>,
    %7 = vector.extract_strided_slice %5 {offsets = [0, 0], sizes = [32, 16], strides = [1, 1]} : vector<32x32xf32> to vector<32x16xf32>
    %c0_7 = arith.constant 0 : index
    %c0_8 = arith.constant 0 : index
    %8 = vector.load %arg4[%c0_7, %c0_8] : memref<16x2xf32, #tpu.memory_space<vmem>>, vector<16x2xf32>
    %cst_9 = arith.constant dense<0.000000e+00> : vector<32x2xf32>
    %9 = tpu.matmul %7, %8, %cst_9 {dimension_numbers = #tpu.dot_dimension_numbers<[1], [0], [0], [1], [0, 0, 1, 1], [], []>} : vector<32x16xf32>, vector<16x2xf32>, vector<32x2xf32> -> vector<32x2xf32>
    %c0_10 = arith.constant 0 : index
    %c0_11 = arith.constant 0 : index
    %10 = vector.load %arg6[%c0_10, %c0_11] : memref<32x2xf32, #tpu.memory_space<vmem>>, vector<32x2xf32>
    tpu.vector_store %arg6[%c0_10, %c0_11], %9 {strides = array<i32>} : memref<32x2xf32, #tpu.memory_space<vmem>>, vector<32x2xf32>,
    return
  }
  func.func @transform_0(%arg0: i32) -> (i32, i32) {
    %c0_i32 = arith.constant 0 : i32
    %c0_i32_0 = arith.constant 0 : i32
    return %arg0, %c0_i32 : i32, i32
  }
  func.func @transform_1(%arg0: i32) -> (i32, i32) {
    %c0_i32 = arith.constant 0 : i32
    %c0_i32_0 = arith.constant 0 : i32
    %c0_i32_1 = arith.constant 0 : i32
    return %c0_i32, %c0_i32_0 : i32, i32
  }
  func.func @transform_2(%arg0: i32) -> (i32, i32) {
    %c0_i32 = arith.constant 0 : i32
    %c0_i32_0 = arith.constant 0 : i32
    %c0_i32_1 = arith.constant 0 : i32
    return %c0_i32, %c0_i32_0 : i32, i32
  }
  func.func @transform_3(%arg0: i32) -> (i32, i32) {
    %c0_i32 = arith.constant 0 : i32
    %c0_i32_0 = arith.constant 0 : i32
    %c0_i32_1 = arith.constant 0 : i32
    return %c0_i32, %c0_i32_0 : i32, i32
  }
  func.func @transform_4(%arg0: i32) -> (i32, i32) {
    %c0_i32 = arith.constant 0 : i32
    %c0_i32_0 = arith.constant 0 : i32
    return %arg0, %c0_i32 : i32, i32
  }
  func.func @transform_5(%arg0: i32) -> (i32, i32) {
    %c0_i32 = arith.constant 0 : i32
    %c0_i32_0 = arith.constant 0 : i32
    return %arg0, %c0_i32 : i32, i32
  }
}

module attributes {stable_mosaic.version = 11 : i64} {
  func.func @_bucket_attn_kernel(%arg0: i32, %arg1: memref<4x8x32xf32, #tpu.memory_space<vmem>>, %arg2: memref<4x8x16xf32, #tpu.memory_space<vmem>>) attributes {dimension_semantics = [#tpu.dimension_semantics<arbitrary>], iteration_bounds = array<i64: 1>, scalar_prefetch = 0 : i64, scratch_operands = 0 : i64, tpu.core_type = #tpu.core_type<tc>, window_params = [{pipeline_mode = #tpu.pipeline_mode<synchronous>, transform_indices = @transform_0, window_bounds = array<i64: 4, 8, 32>}, {pipeline_mode = #tpu.pipeline_mode<synchronous>, transform_indices = @transform_1, window_bounds = array<i64: 4, 8, 16>}]} {
    %c0 = arith.constant 0 : index
    %c0_0 = arith.constant 0 : index
    %c0_1 = arith.constant 0 : index
    %0 = vector.load %arg1[%c0, %c0_0, %c0_1] : memref<4x8x32xf32, #tpu.memory_space<vmem>>, vector<4x8x32xf32>
    %1 = vector.extract_strided_slice %0 {offsets = [0, 0, 0], sizes = [4, 8, 16], strides = [1, 1, 1]} : vector<4x8x32xf32> to vector<4x8x16xf32>
    %2 = vector.extract_strided_slice %0 {offsets = [0, 0, 16], sizes = [4, 8, 16], strides = [1, 1, 1]} : vector<4x8x32xf32> to vector<4x8x16xf32>
    "tpu.trace_start"() <{level = 10 : i32, message = "bqd,bkd->bqk"}> : () -> ()
    %cst = arith.constant dense<0.000000e+00> : vector<4x8x8xf32>
    %3 = tpu.matmul %1, %1, %cst {dimension_numbers = #tpu.dot_dimension_numbers<[2], [2], [1], [1], [0, 0, 0, 1, 1, 1], [0], [0]>} : vector<4x8x16xf32>, vector<4x8x16xf32>, vector<4x8x8xf32> -> vector<4x8x8xf32>
    "tpu.trace_stop"() : () -> ()
    %4 = tpu.iota {dimensions = array<i32: 0>} : vector<8x8xi32>
    %5 = tpu.iota {dimensions = array<i32: 1>} : vector<8x8xi32>
    %6 = arith.cmpi eq, %4, %5 : vector<8x8xi32>
    %cst_2 = arith.constant 3.53553401E-6 : f32
    %cst_3 = arith.constant 0.353553385 : f32
    %7 = vector.broadcast %cst_2 : f32 to vector<8x8xf32>
    %8 = vector.broadcast %cst_3 : f32 to vector<8x8xf32>
    %9 = arith.select %6, %7, %8 : vector<8x8xi1>, vector<8x8xf32>
    %10 = vector.shape_cast %9 : vector<8x8xf32> to vector<1x8x8xf32>
    %11 = vector.broadcast %10 : vector<1x8x8xf32> to vector<4x8x8xf32>
    %12 = arith.mulf %3, %11 : vector<4x8x8xf32>
    "tpu.trace_start"() <{level = 10 : i32, message = "bqk,bkd->bqd"}> : () -> ()
    %cst_4 = arith.constant dense<0.000000e+00> : vector<4x8x16xf32>
    %13 = tpu.matmul %12, %2, %cst_4 {dimension_numbers = #tpu.dot_dimension_numbers<[2], [1], [1], [2], [0, 0, 0, 1, 1, 2], [0], [0]>} : vector<4x8x8xf32>, vector<4x8x16xf32>, vector<4x8x16xf32> -> vector<4x8x16xf32>
    "tpu.trace_stop"() : () -> ()
    %c0_5 = arith.constant 0 : index
    %c0_6 = arith.constant 0 : index
    %c0_7 = arith.constant 0 : index
    %14 = vector.load %arg2[%c0_5, %c0_6, %c0_7] : memref<4x8x16xf32, #tpu.memory_space<vmem>>, vector<4x8x16xf32>
    tpu.vector_store %arg2[%c0_5, %c0_6, %c0_7], %13 {strides = array<i32>} : memref<4x8x16xf32, #tpu.memory_space<vmem>>, vector<4x8x16xf32>,
    return
  }
  func.func @transform_0(%arg0: i32) -> (i32, i32, i32) {
    %c0_i32 = arith.constant 0 : i32
    %c0_i32_0 = arith.constant 0 : i32
    %c0_i32_1 = arith.constant 0 : i32
    %c0_i32_2 = arith.constant 0 : i32
    return %c0_i32, %c0_i32_0, %c0_i32_1 : i32, i32, i32
  }
  func.func @transform_1(%arg0: i32) -> (i32, i32, i32) {
    %c0_i32 = arith.constant 0 : i32
    %c0_i32_0 = arith.constant 0 : i32
    %c0_i32_1 = arith.constant 0 : i32
    %c0_i32_2 = arith.constant 0 : i32
    return %c0_i32, %c0_i32_0, %c0_i32_1 : i32, i32, i32
  }
}

module attributes {stable_mosaic.version = 11 : i64} {
  func.func @_encoder_tail_kernel(%arg0: i32, %arg1: memref<32x16xf32, #tpu.memory_space<vmem>>, %arg2: memref<32x16xf32, #tpu.memory_space<vmem>>, %arg3: memref<32x16xf32, #tpu.memory_space<vmem>>, %arg4: memref<16x16xf32, #tpu.memory_space<vmem>>, %arg5: memref<1x16xf32, #tpu.memory_space<vmem>>, %arg6: memref<1x16xf32, #tpu.memory_space<vmem>>, %arg7: memref<1x16xf32, #tpu.memory_space<vmem>>, %arg8: memref<16x64xf32, #tpu.memory_space<vmem>>, %arg9: memref<1x64xf32, #tpu.memory_space<vmem>>, %arg10: memref<64x16xf32, #tpu.memory_space<vmem>>, %arg11: memref<1x16xf32, #tpu.memory_space<vmem>>, %arg12: memref<1x16xf32, #tpu.memory_space<vmem>>, %arg13: memref<1x16xf32, #tpu.memory_space<vmem>>, %arg14: memref<16x16xf32, #tpu.memory_space<vmem>>, %arg15: memref<16x16xf32, #tpu.memory_space<vmem>>, %arg16: memref<1x16xf32, #tpu.memory_space<vmem>>, %arg17: memref<16x16xf32, #tpu.memory_space<vmem>>, %arg18: memref<1x16xf32, #tpu.memory_space<vmem>>, %arg19: memref<32x16xf32, #tpu.memory_space<vmem>>) attributes {dimension_semantics = [#tpu.dimension_semantics<parallel>], iteration_bounds = array<i64: 1>, scalar_prefetch = 0 : i64, scratch_operands = 0 : i64, tpu.core_type = #tpu.core_type<tc>, window_params = [{transform_indices = @transform_0, window_bounds = array<i64: 32, 16>}, {transform_indices = @transform_1, window_bounds = array<i64: 32, 16>}, {transform_indices = @transform_2, window_bounds = array<i64: 32, 16>}, {pipeline_mode = #tpu.pipeline_mode<synchronous>, transform_indices = @transform_3, window_bounds = array<i64: 16, 16>}, {pipeline_mode = #tpu.pipeline_mode<synchronous>, transform_indices = @transform_4, window_bounds = array<i64: 1, 16>}, {pipeline_mode = #tpu.pipeline_mode<synchronous>, transform_indices = @transform_5, window_bounds = array<i64: 1, 16>}, {pipeline_mode = #tpu.pipeline_mode<synchronous>, transform_indices = @transform_6, window_bounds = array<i64: 1, 16>}, {pipeline_mode = #tpu.pipeline_mode<synchronous>, transform_indices = @transform_7, window_bounds = array<i64: 16, 64>}, {pipeline_mode = #tpu.pipeline_mode<synchronous>, transform_indices = @transform_8, window_bounds = array<i64: 1, 64>}, {pipeline_mode = #tpu.pipeline_mode<synchronous>, transform_indices = @transform_9, window_bounds = array<i64: 64, 16>}, {pipeline_mode = #tpu.pipeline_mode<synchronous>, transform_indices = @transform_10, window_bounds = array<i64: 1, 16>}, {pipeline_mode = #tpu.pipeline_mode<synchronous>, transform_indices = @transform_11, window_bounds = array<i64: 1, 16>}, {pipeline_mode = #tpu.pipeline_mode<synchronous>, transform_indices = @transform_12, window_bounds = array<i64: 1, 16>}, {pipeline_mode = #tpu.pipeline_mode<synchronous>, transform_indices = @transform_13, window_bounds = array<i64: 16, 16>}, {pipeline_mode = #tpu.pipeline_mode<synchronous>, transform_indices = @transform_14, window_bounds = array<i64: 16, 16>}, {pipeline_mode = #tpu.pipeline_mode<synchronous>, transform_indices = @transform_15, window_bounds = array<i64: 1, 16>}, {pipeline_mode = #tpu.pipeline_mode<synchronous>, transform_indices = @transform_16, window_bounds = array<i64: 16, 16>}, {pipeline_mode = #tpu.pipeline_mode<synchronous>, transform_indices = @transform_17, window_bounds = array<i64: 1, 16>}, {transform_indices = @transform_18, window_bounds = array<i64: 32, 16>}]} {
    %c0 = arith.constant 0 : index
    %c0_0 = arith.constant 0 : index
    %0 = vector.load %arg1[%c0, %c0_0] : memref<32x16xf32, #tpu.memory_space<vmem>>, vector<32x16xf32>
    %c0_1 = arith.constant 0 : index
    %c0_2 = arith.constant 0 : index
    %1 = vector.load %arg4[%c0_1, %c0_2] : memref<16x16xf32, #tpu.memory_space<vmem>>, vector<16x16xf32>
    %cst = arith.constant dense<0.000000e+00> : vector<32x16xf32>
    %2 = tpu.matmul %0, %1, %cst {dimension_numbers = #tpu.dot_dimension_numbers<[1], [0], [0], [1], [0, 0, 1, 1], [], []>} : vector<32x16xf32>, vector<16x16xf32>, vector<32x16xf32> -> vector<32x16xf32>
    %c0_3 = arith.constant 0 : index
    %c0_4 = arith.constant 0 : index
    %3 = vector.load %arg5[%c0_3, %c0_4] : memref<1x16xf32, #tpu.memory_space<vmem>>, vector<1x16xf32>
    %4 = vector.broadcast %3 : vector<1x16xf32> to vector<32x16xf32>
    %5 = arith.addf %2, %4 : vector<32x16xf32>
    %c0_5 = arith.constant 0 : index
    %c0_6 = arith.constant 0 : index
    %6 = vector.load %arg2[%c0_5, %c0_6] : memref<32x16xf32, #tpu.memory_space<vmem>>, vector<32x16xf32>
    %7 = arith.addf %6, %5 : vector<32x16xf32>
    %c0_7 = arith.constant 0 : index
    %c0_8 = arith.constant 0 : index
    %8 = vector.load %arg6[%c0_7, %c0_8] : memref<1x16xf32, #tpu.memory_space<vmem>>, vector<1x16xf32>
    %c0_9 = arith.constant 0 : index
    %c0_10 = arith.constant 0 : index
    %9 = vector.load %arg7[%c0_9, %c0_10] : memref<1x16xf32, #tpu.memory_space<vmem>>, vector<1x16xf32>
    %cst_11 = arith.constant dense<0.000000e+00> : vector<32xf32>
    %10 = vector.multi_reduction <add>, %7, %cst_11 [1] : vector<32x16xf32> to vector<32xf32>
    %11 = vector.shape_cast %10 : vector<32xf32> to vector<32x1xf32>
    %cst_12 = arith.constant 1.600000e+01 : f32
    %12 = vector.broadcast %cst_12 : f32 to vector<32x1xf32>
    %13 = arith.divf %11, %12 : vector<32x1xf32>
    %14 = vector.broadcast %13 : vector<32x1xf32> to vector<32x16xf32>
    %15 = arith.subf %7, %14 : vector<32x16xf32>
    %16 = arith.mulf %15, %15 : vector<32x16xf32>
    %cst_13 = arith.constant dense<0.000000e+00> : vector<32xf32>
    %17 = vector.multi_reduction <add>, %16, %cst_13 [1] : vector<32x16xf32> to vector<32xf32>
    %18 = vector.shape_cast %17 : vector<32xf32> to vector<32x1xf32>
    %cst_14 = arith.constant 1.600000e+01 : f32
    %19 = vector.broadcast %cst_14 : f32 to vector<32x1xf32>
    %20 = arith.divf %18, %19 : vector<32x1xf32>
    %cst_15 = arith.constant 9.99999974E-6 : f32
    %21 = vector.broadcast %cst_15 : f32 to vector<32x1xf32>
    %22 = arith.addf %20, %21 : vector<32x1xf32>
    %23 = math.rsqrt %22 : vector<32x1xf32>
    %24 = vector.broadcast %23 : vector<32x1xf32> to vector<32x16xf32>
    %25 = arith.mulf %15, %24 : vector<32x16xf32>
    %26 = vector.broadcast %8 : vector<1x16xf32> to vector<32x16xf32>
    %27 = arith.mulf %25, %26 : vector<32x16xf32>
    %28 = vector.broadcast %9 : vector<1x16xf32> to vector<32x16xf32>
    %29 = arith.addf %27, %28 : vector<32x16xf32>
    %c0_16 = arith.constant 0 : index
    %c0_17 = arith.constant 0 : index
    %30 = vector.load %arg8[%c0_16, %c0_17] : memref<16x64xf32, #tpu.memory_space<vmem>>, vector<16x64xf32>
    %cst_18 = arith.constant dense<0.000000e+00> : vector<32x64xf32>
    %31 = tpu.matmul %29, %30, %cst_18 {dimension_numbers = #tpu.dot_dimension_numbers<[1], [0], [0], [1], [0, 0, 1, 1], [], []>} : vector<32x16xf32>, vector<16x64xf32>, vector<32x64xf32> -> vector<32x64xf32>
    %c0_19 = arith.constant 0 : index
    %c0_20 = arith.constant 0 : index
    %32 = vector.load %arg9[%c0_19, %c0_20] : memref<1x64xf32, #tpu.memory_space<vmem>>, vector<1x64xf32>
    %33 = vector.broadcast %32 : vector<1x64xf32> to vector<32x64xf32>
    %34 = arith.addf %31, %33 : vector<32x64xf32>
    %cst_21 = arith.constant 0.000000e+00 : f32
    %35 = vector.broadcast %cst_21 : f32 to vector<32x64xf32>
    %36 = arith.maximumf %34, %35 : vector<32x64xf32>
    %c0_22 = arith.constant 0 : index
    %c0_23 = arith.constant 0 : index
    %37 = vector.load %arg10[%c0_22, %c0_23] : memref<64x16xf32, #tpu.memory_space<vmem>>, vector<64x16xf32>
    %cst_24 = arith.constant dense<0.000000e+00> : vector<32x16xf32>
    %38 = tpu.matmul %36, %37, %cst_24 {dimension_numbers = #tpu.dot_dimension_numbers<[1], [0], [0], [1], [0, 0, 1, 1], [], []>} : vector<32x64xf32>, vector<64x16xf32>, vector<32x16xf32> -> vector<32x16xf32>
    %c0_25 = arith.constant 0 : index
    %c0_26 = arith.constant 0 : index
    %39 = vector.load %arg11[%c0_25, %c0_26] : memref<1x16xf32, #tpu.memory_space<vmem>>, vector<1x16xf32>
    %40 = vector.broadcast %39 : vector<1x16xf32> to vector<32x16xf32>
    %41 = arith.addf %38, %40 : vector<32x16xf32>
    %c0_27 = arith.constant 0 : index
    %c0_28 = arith.constant 0 : index
    %42 = vector.load %arg3[%c0_27, %c0_28] : memref<32x16xf32, #tpu.memory_space<vmem>>, vector<32x16xf32>
    %43 = arith.addf %42, %41 : vector<32x16xf32>
    %c0_29 = arith.constant 0 : index
    %c0_30 = arith.constant 0 : index
    %44 = vector.load %arg12[%c0_29, %c0_30] : memref<1x16xf32, #tpu.memory_space<vmem>>, vector<1x16xf32>
    %c0_31 = arith.constant 0 : index
    %c0_32 = arith.constant 0 : index
    %45 = vector.load %arg13[%c0_31, %c0_32] : memref<1x16xf32, #tpu.memory_space<vmem>>, vector<1x16xf32>
    %cst_33 = arith.constant dense<0.000000e+00> : vector<32xf32>
    %46 = vector.multi_reduction <add>, %43, %cst_33 [1] : vector<32x16xf32> to vector<32xf32>
    %47 = vector.shape_cast %46 : vector<32xf32> to vector<32x1xf32>
    %cst_34 = arith.constant 1.600000e+01 : f32
    %48 = vector.broadcast %cst_34 : f32 to vector<32x1xf32>
    %49 = arith.divf %47, %48 : vector<32x1xf32>
    %50 = vector.broadcast %49 : vector<32x1xf32> to vector<32x16xf32>
    %51 = arith.subf %43, %50 : vector<32x16xf32>
    %52 = arith.mulf %51, %51 : vector<32x16xf32>
    %cst_35 = arith.constant dense<0.000000e+00> : vector<32xf32>
    %53 = vector.multi_reduction <add>, %52, %cst_35 [1] : vector<32x16xf32> to vector<32xf32>
    %54 = vector.shape_cast %53 : vector<32xf32> to vector<32x1xf32>
    %cst_36 = arith.constant 1.600000e+01 : f32
    %55 = vector.broadcast %cst_36 : f32 to vector<32x1xf32>
    %56 = arith.divf %54, %55 : vector<32x1xf32>
    %cst_37 = arith.constant 9.99999974E-6 : f32
    %57 = vector.broadcast %cst_37 : f32 to vector<32x1xf32>
    %58 = arith.addf %56, %57 : vector<32x1xf32>
    %59 = math.rsqrt %58 : vector<32x1xf32>
    %60 = vector.broadcast %59 : vector<32x1xf32> to vector<32x16xf32>
    %61 = arith.mulf %51, %60 : vector<32x16xf32>
    %62 = vector.broadcast %44 : vector<1x16xf32> to vector<32x16xf32>
    %63 = arith.mulf %61, %62 : vector<32x16xf32>
    %64 = vector.broadcast %45 : vector<1x16xf32> to vector<32x16xf32>
    %65 = arith.addf %63, %64 : vector<32x16xf32>
    %c0_38 = arith.constant 0 : index
    %c0_39 = arith.constant 0 : index
    %66 = vector.load %arg14[%c0_38, %c0_39] : memref<16x16xf32, #tpu.memory_space<vmem>>, vector<16x16xf32>
    %cst_40 = arith.constant dense<0.000000e+00> : vector<32x16xf32>
    %67 = tpu.matmul %29, %66, %cst_40 {dimension_numbers = #tpu.dot_dimension_numbers<[1], [0], [0], [1], [0, 0, 1, 1], [], []>} : vector<32x16xf32>, vector<16x16xf32>, vector<32x16xf32> -> vector<32x16xf32>
    %c0_41 = arith.constant 0 : index
    %c0_42 = arith.constant 0 : index
    %68 = vector.load %arg15[%c0_41, %c0_42] : memref<16x16xf32, #tpu.memory_space<vmem>>, vector<16x16xf32>
    %cst_43 = arith.constant dense<0.000000e+00> : vector<32x16xf32>
    %69 = tpu.matmul %65, %68, %cst_43 {dimension_numbers = #tpu.dot_dimension_numbers<[1], [0], [0], [1], [0, 0, 1, 1], [], []>} : vector<32x16xf32>, vector<16x16xf32>, vector<32x16xf32> -> vector<32x16xf32>
    %70 = arith.addf %67, %69 : vector<32x16xf32>
    %c0_44 = arith.constant 0 : index
    %c0_45 = arith.constant 0 : index
    %71 = vector.load %arg16[%c0_44, %c0_45] : memref<1x16xf32, #tpu.memory_space<vmem>>, vector<1x16xf32>
    %72 = vector.broadcast %71 : vector<1x16xf32> to vector<32x16xf32>
    %73 = arith.addf %70, %72 : vector<32x16xf32>
    %cst_46 = arith.constant 0.000000e+00 : f32
    %74 = vector.broadcast %cst_46 : f32 to vector<32x16xf32>
    %75 = arith.maximumf %73, %74 : vector<32x16xf32>
    %c0_47 = arith.constant 0 : index
    %c0_48 = arith.constant 0 : index
    %76 = vector.load %arg17[%c0_47, %c0_48] : memref<16x16xf32, #tpu.memory_space<vmem>>, vector<16x16xf32>
    %cst_49 = arith.constant dense<0.000000e+00> : vector<32x16xf32>
    %77 = tpu.matmul %75, %76, %cst_49 {dimension_numbers = #tpu.dot_dimension_numbers<[1], [0], [0], [1], [0, 0, 1, 1], [], []>} : vector<32x16xf32>, vector<16x16xf32>, vector<32x16xf32> -> vector<32x16xf32>
    %c0_50 = arith.constant 0 : index
    %c0_51 = arith.constant 0 : index
    %78 = vector.load %arg18[%c0_50, %c0_51] : memref<1x16xf32, #tpu.memory_space<vmem>>, vector<1x16xf32>
    %79 = vector.broadcast %78 : vector<1x16xf32> to vector<32x16xf32>
    %80 = arith.addf %77, %79 : vector<32x16xf32>
    %cst_52 = arith.constant 0.000000e+00 : f32
    %81 = vector.broadcast %cst_52 : f32 to vector<32x16xf32>
    %82 = arith.maximumf %80, %81 : vector<32x16xf32>
    %83 = arith.negf %82 : vector<32x16xf32>
    %84 = math.exp %83 : vector<32x16xf32>
    %cst_53 = arith.constant 1.000000e+00 : f32
    %85 = vector.broadcast %cst_53 : f32 to vector<32x16xf32>
    %86 = arith.addf %85, %84 : vector<32x16xf32>
    %87 = arith.divf %85, %86 : vector<32x16xf32>
    %c0_54 = arith.constant 0 : index
    %c0_55 = arith.constant 0 : index
    %88 = vector.load %arg19[%c0_54, %c0_55] : memref<32x16xf32, #tpu.memory_space<vmem>>, vector<32x16xf32>
    tpu.vector_store %arg19[%c0_54, %c0_55], %87 {strides = array<i32>} : memref<32x16xf32, #tpu.memory_space<vmem>>, vector<32x16xf32>,
    return
  }
  func.func @transform_0(%arg0: i32) -> (i32, i32) {
    %c0_i32 = arith.constant 0 : i32
    %c0_i32_0 = arith.constant 0 : i32
    return %arg0, %c0_i32 : i32, i32
  }
  func.func @transform_1(%arg0: i32) -> (i32, i32) {
    %c0_i32 = arith.constant 0 : i32
    %c0_i32_0 = arith.constant 0 : i32
    return %arg0, %c0_i32 : i32, i32
  }
  func.func @transform_2(%arg0: i32) -> (i32, i32) {
    %c0_i32 = arith.constant 0 : i32
    %c0_i32_0 = arith.constant 0 : i32
    return %arg0, %c0_i32 : i32, i32
  }
  func.func @transform_3(%arg0: i32) -> (i32, i32) {
    %c0_i32 = arith.constant 0 : i32
    %c0_i32_0 = arith.constant 0 : i32
    %c0_i32_1 = arith.constant 0 : i32
    return %c0_i32, %c0_i32_0 : i32, i32
  }
  func.func @transform_4(%arg0: i32) -> (i32, i32) {
    %c0_i32 = arith.constant 0 : i32
    %c0_i32_0 = arith.constant 0 : i32
    %c0_i32_1 = arith.constant 0 : i32
    return %c0_i32, %c0_i32_0 : i32, i32
  }
  func.func @transform_5(%arg0: i32) -> (i32, i32) {
    %c0_i32 = arith.constant 0 : i32
    %c0_i32_0 = arith.constant 0 : i32
    %c0_i32_1 = arith.constant 0 : i32
    return %c0_i32, %c0_i32_0 : i32, i32
  }
  func.func @transform_6(%arg0: i32) -> (i32, i32) {
    %c0_i32 = arith.constant 0 : i32
    %c0_i32_0 = arith.constant 0 : i32
    %c0_i32_1 = arith.constant 0 : i32
    return %c0_i32, %c0_i32_0 : i32, i32
  }
  func.func @transform_7(%arg0: i32) -> (i32, i32) {
    %c0_i32 = arith.constant 0 : i32
    %c0_i32_0 = arith.constant 0 : i32
    %c0_i32_1 = arith.constant 0 : i32
    return %c0_i32, %c0_i32_0 : i32, i32
  }
  func.func @transform_8(%arg0: i32) -> (i32, i32) {
    %c0_i32 = arith.constant 0 : i32
    %c0_i32_0 = arith.constant 0 : i32
    %c0_i32_1 = arith.constant 0 : i32
    return %c0_i32, %c0_i32_0 : i32, i32
  }
  func.func @transform_9(%arg0: i32) -> (i32, i32) {
    %c0_i32 = arith.constant 0 : i32
    %c0_i32_0 = arith.constant 0 : i32
    %c0_i32_1 = arith.constant 0 : i32
    return %c0_i32, %c0_i32_0 : i32, i32
  }
  func.func @transform_10(%arg0: i32) -> (i32, i32) {
    %c0_i32 = arith.constant 0 : i32
    %c0_i32_0 = arith.constant 0 : i32
    %c0_i32_1 = arith.constant 0 : i32
    return %c0_i32, %c0_i32_0 : i32, i32
  }
  func.func @transform_11(%arg0: i32) -> (i32, i32) {
    %c0_i32 = arith.constant 0 : i32
    %c0_i32_0 = arith.constant 0 : i32
    %c0_i32_1 = arith.constant 0 : i32
    return %c0_i32, %c0_i32_0 : i32, i32
  }
  func.func @transform_12(%arg0: i32) -> (i32, i32) {
    %c0_i32 = arith.constant 0 : i32
    %c0_i32_0 = arith.constant 0 : i32
    %c0_i32_1 = arith.constant 0 : i32
    return %c0_i32, %c0_i32_0 : i32, i32
  }
  func.func @transform_13(%arg0: i32) -> (i32, i32) {
    %c0_i32 = arith.constant 0 : i32
    %c0_i32_0 = arith.constant 0 : i32
    %c0_i32_1 = arith.constant 0 : i32
    return %c0_i32, %c0_i32_0 : i32, i32
  }
  func.func @transform_14(%arg0: i32) -> (i32, i32) {
    %c0_i32 = arith.constant 0 : i32
    %c0_i32_0 = arith.constant 0 : i32
    %c0_i32_1 = arith.constant 0 : i32
    return %c0_i32, %c0_i32_0 : i32, i32
  }
  func.func @transform_15(%arg0: i32) -> (i32, i32) {
    %c0_i32 = arith.constant 0 : i32
    %c0_i32_0 = arith.constant 0 : i32
    %c0_i32_1 = arith.constant 0 : i32
    return %c0_i32, %c0_i32_0 : i32, i32
  }
  func.func @transform_16(%arg0: i32) -> (i32, i32) {
    %c0_i32 = arith.constant 0 : i32
    %c0_i32_0 = arith.constant 0 : i32
    %c0_i32_1 = arith.constant 0 : i32
    return %c0_i32, %c0_i32_0 : i32, i32
  }
  func.func @transform_17(%arg0: i32) -> (i32, i32) {
    %c0_i32 = arith.constant 0 : i32
    %c0_i32_0 = arith.constant 0 : i32
    %c0_i32_1 = arith.constant 0 : i32
    return %c0_i32, %c0_i32_0 : i32, i32
  }
  func.func @transform_18(%arg0: i32) -> (i32, i32) {
    %c0_i32 = arith.constant 0 : i32
    %c0_i32_0 = arith.constant 0 : i32
    return %arg0, %c0_i32 : i32, i32
  }
}

</mosaic_0001>

<bundles_post_ra>
// kernel: neg.1
= control target key start
LH: loop header
LB: loop body
LE: loop exit
PB: predicated region body
PF: predicated region fallthrough
CT: control target
= control target key end

     0   :  { %s72_s0 = inlined_call_operand.vmem [shape: f32[32,2], index: 0, kind: input, shape index: {}]   ;;  %s73_s1 = inlined_call_operand.vmem [shape: f32[32,2], index: 1, kind: output, shape index: {}]  }
   0x1   :  { %v2_v0 = vld [vmem:[%s72_s0] sm:$0xff]  ;;  %v32_v1 = vld [vmem:[%s72_s0 + $0x8] sm:$0xff]  ;;  %v34_v2 = vld [vmem:[%s72_s0 + $0x10] sm:$0xff] }
   0x2   :  { %v5_v3 = vxor.u32 2147483648, %v2_v0  ;;  %v12_v4 = vxor.u32 2147483648, %v32_v1  ;;  %v20_v5 = vxor.u32 2147483648, %v34_v2  ;;  %v36_v6 = vld [vmem:[%s72_s0 + $0x18] sm:$0xff] }
   0x3   :  { %v28_v7 = vxor.u32 2147483648, %v36_v6 }
   0x4   :  { %7 = vst [vmem:[%s73_s1] sm:$0xff] %v5_v3  ;;  %33 = vst [vmem:[%s73_s1 + $0x8] sm:$0xff] %v12_v4 }
   0x5   :  { %35 = vst [vmem:[%s73_s1 + $0x10] sm:$0xff] %v20_v5  ;;  %37 = vst [vmem:[%s73_s1 + $0x18] sm:$0xff] %v28_v7 }

// kernel: genia_reformer2_forward.3
= control target key start
LH: loop header
LB: loop body
LE: loop exit
PB: predicated region body
PF: predicated region fallthrough
CT: control target
= control target key end

     0   :  { %vm32_vm0 = vcmask 130048   ;;  %vm130_vm1 = vcmask 261120   ;;  %vm234_vm2 = vcmask 15360   ;;  %s385_s1 = inlined_call_operand.vmem [shape: f32[16,32], index: 1, kind: input, shape index: {}]   ;;  %s386_s0 = inlined_call_operand.vmem [shape: f32[32,16], index: 0, kind: input, shape index: {}]   ;;  %s387_s3 = inlined_call_operand.vmem [shape: f32[16,2], index: 3, kind: input, shape index: {}]   ;;  %s388_s2 = inlined_call_operand.vmem [shape: f32[1,32], index: 2, kind: input, shape index: {}]   ;;  %s389_s4 = inlined_call_operand.vmem [shape: f32[32,32], index: 4, kind: output, shape index: {0}]   ;;  %s390_s5 = inlined_call_operand.vmem [shape: f32[32,2], index: 5, kind: output, shape index: {1}]  }
   0x1   :  { %v23_v0 = vld [vmem:[%s385_s1] sm:$0xff]  ;;  %v24_v1 = vld [vmem:[%s385_s1 + $0x8] sm:$0xff]  ;;  %v21_v5 = vld [vmem:[%s386_s0 + $0x10] sm:$0xff] }
   0x2   :  { %v19_v2 = vld [vmem:[%s386_s0] sm:$0xff]  ;;  %v288_v3 = vpack.c.bf16 %v24_v1, %v23_v0  ;;  %v20_v4 = vld [vmem:[%s386_s0 + $0x8] sm:$0xff]  ;;  %v22_v6 = vld [vmem:[%s386_s0 + $0x18] sm:$0xff] }
   0x3   :  { %272 = vmatprep.mubr.msk.f32.mxu0 %vm32_vm0, %v19_v2  ;;  %v135_v7 = vld [vmem:[%s387_s3] sm:$0xff]  ;;  %v136_v8 = vld [vmem:[%s387_s3 + $0x8] sm:$0xff] }
   0x4   :  { %289 = vmatprep.subr.bf16.mxu0 %v288_v3  ;;  %v292_v9 = vpack.c.bf16 %v136_v8, %v135_v7  ;;  %v247_v10 = vld [vmem:[%s388_s2] ss:$0 sm:$0xff] }
   0x5   :  { %291 = vmatpush3.bf16.msra.mxu0 %v288_v3 }
   0x6   :  { %293 = vmatprep.subr.bf16.mxu1 %v292_v9 }
   0x7   :  { %295 = vmatpush3.bf16.msra.mxu1 %v292_v9 }
   0x8   :  { %273 = vmatmul.mubr.msk.f32.vlgmr.msra.gmra.mrb[0].mxu0 %vm32_vm0, %v20_v4 }
   0x9   :  { %275 = vmatprep.mubr.msk.f32.mxu0 %vm32_vm0, %v21_v5 }
   0xc   :  { %276 = vmatmul.mubr.msk.f32.gmra.mrb[2].mxu0 %vm32_vm0, %v22_v6 }
  0xdb   :  { %v274_v11 = vpop.f32.mrb[0].mxu0 }
  0xdc   :  { %v117_v12 = vadd.f32 %v274_v11, %v247_v10  ;;  %v111_v13 = vpop.f32.mrb[1].mxu0 }
  0xdd   :  { %v112_v14 = vadd.f32 %v247_v10, %v111_v13 }
  0xde   :  { %132 = vst.msk [vmem:[%s389_s4 + $0x8] sm:$0xff] %vm130_vm1, %v117_v12 }
  0xdf   :  { %131 = vst.msk [vmem:[%s389_s4] sm:$0xff] %vm130_vm1, %v112_v14  ;;  %v277_v15 = vpop.f32.mrb[2].mxu0  ;;  %282 = vmatprep.mubr.msk.f32.mxu1 %vm32_vm0, %v112_v14 }
  0xe0   :  { %v127_v16 = vadd.f32 %v277_v15, %v247_v10  ;;  %v121_v17 = vpop.f32.mrb[3].mxu0  ;;  %283 = vmatmul.mubr.msk.f32.vlgmr.msra.gmra.mrb[0].mxu1 %vm32_vm0, %v117_v12 }
  0xe1   :  { %v122_v18 = vadd.f32 %v247_v10, %v121_v17 }
  0xe2   :  { %134 = vst.msk [vmem:[%s389_s4 + $0x18] sm:$0xff] %vm130_vm1, %v127_v16 }
  0xe3   :  { %133 = vst.msk [vmem:[%s389_s4 + $0x10] sm:$0xff] %vm130_vm1, %v122_v18  ;;  %285 = vmatprep.mubr.msk.f32.mxu1 %vm32_vm0, %v122_v18 }
  0xe4   :  { %286 = vmatmul.mubr.msk.f32.gmra.mrb[2].mxu1 %vm32_vm0, %v127_v16 }
 0x1b3   :  { %v284_v19 = vpop.f32.mrb[0].mxu1 }
 0x1b4   :  { %236 = vst.msk [vmem:[%s390_s5 + $0x8] sm:$0xff] %vm234_vm2, %v284_v19  ;;  %v215_v20 = vpop.f32.mrb[1].mxu1 }
 0x1b5   :  { %235 = vst.msk [vmem:[%s390_s5] sm:$0xff] %vm234_vm2, %v215_v20 }
 0x1b7   :  { %v287_v21 = vpop.f32.mrb[2].mxu1 }
 0x1b8   :  { %238 = vst.msk [vmem:[%s390_s5 + $0x18] sm:$0xff] %vm234_vm2, %v287_v21  ;;  %v225_v22 = vpop.f32.mrb[3].mxu1 }
 0x1b9   :  { %237 = vst.msk [vmem:[%s390_s5 + $0x10] sm:$0xff] %vm234_vm2, %v225_v22 }

// kernel: genia_reformer2_forward.4
= control target key start
LH: loop header
LB: loop body
LE: loop exit
PB: predicated region body
PF: predicated region fallthrough
CT: control target
= control target key end

     0   :  { %vm12_vm0 = vcmask 130048   ;;  %v700_v0 = vmov 0.0   ;;  %vm701_vm1 = vmmov 0   ;;  %s702_s14 = smov 112   ;;  %v305_v7 = vlaneseq  ;;  %s778_s0 = inlined_call_operand.vmem [shape: f32[4,8,32], index: 0, kind: input, shape index: {}]   ;;  %s779_s1 = inlined_call_operand.vmem [shape: f32[4,8,16], index: 1, kind: output, shape index: {}]  }
   0x1   :  { %656 = vmatprep.subr.mxu0 %v700_v0  ;;  %661 = vmatprep.subr.mxu1 %v700_v0  ;;  %v8_v1 = vld [vmem:[%s778_s0] sm:$0xff]  ;;  %v9_v2 = vld [vmem:[%s778_s0 + $0x8] sm:$0xff]  ;;  %v10_v3 = vld [vmem:[%s778_s0 + $0x10] sm:$0xff]  ;;  %v703_v11 = vmov 0.35355338   ;;  %vm318_vm3 = vcmask 64512  }
   0x2   :  { %657 = vmatpush3.xpose.msk.msra.mxu0 %vm12_vm0, %v8_v1  ;;  %662 = vmatpush3.xpose.msk.msra.mxu1 %vm12_vm0, %v9_v2  ;;  %v11_v4 = vld [vmem:[%s778_s0 + $0x18] sm:$0xff]  ;;  %v306_v8 = vshrl.u32 %v305_v7, 7  ;;  %v308_v9 = vand.u32 127, %v305_v7 }
   0x3   :  { %658 = vmatprep.mubr.msk.f32.mxu0 %vm701_vm1, %v700_v0  ;;  %663 = vmatprep.mubr.msk.f32.mxu1 %vm701_vm1, %v700_v0 }
   0x4   :  { %666 = vmatprep.subr.mxu0 %v700_v0  ;;  %671 = vmatprep.subr.mxu1 %v700_v0  ;;  %vm309_vm2 = vcmp.eq.s32.totalorder %v306_v8, %v308_v9 }
   0x5   :  { %659 = vmatmul.mubr.msk.f32.vlgmr.msra.gmra.mrb[0].mxu0 %vm12_vm0, %v8_v1  ;;  %664 = vmatmul.mubr.msk.f32.vlgmr.msra.gmra.mrb[0].mxu1 %vm12_vm0, %v9_v2  ;;  %v310_v12 = vsel %vm309_vm2, 3.535534e-06, %v703_v11 }
   0x6   :  { %667 = vmatpush3.xpose.msk.msra.mxu0 %vm12_vm0, %v10_v3  ;;  %672 = vmatpush3.xpose.msk.msra.mxu1 %vm12_vm0, %v11_v4 }
   0x7   :  { %668 = vmatprep.mubr.msk.f32.mxu0 %vm701_vm1, %v700_v0  ;;  %673 = vmatprep.mubr.msk.f32.mxu1 %vm701_vm1, %v700_v0 }
   0x8   :  { %315 = vrot.lane.b32.xlu0 %v8_v1, %s702_s14  ;;  %468 = vrot.lane.b32.xlu1 %v10_v3, %s702_s14 }
   0x9   :  { %669 = vmatmul.mubr.msk.f32.vlgmr.msra.gmra.mrb[2].mxu0 %vm12_vm0, %v10_v3  ;;  %674 = vmatmul.mubr.msk.f32.vlgmr.msra.gmra.mrb[2].mxu1 %vm12_vm0, %v11_v4 }
   0xa   :  { %676 = vmatprep.subr.mxu0 %v700_v0  ;;  %681 = vmatprep.subr.mxu1 %v700_v0 }
   0xb   :  { %678 = vmatprep.mubr.msk.f32.mxu0 %vm701_vm1, %v700_v0  ;;  %683 = vmatprep.mubr.msk.f32.mxu1 %vm701_vm1, %v700_v0 }
   0xc   :  { %392 = vrot.lane.b32.xlu0 %v9_v2, %s702_s14  ;;  %544 = vrot.lane.b32.xlu1 %v11_v4, %s702_s14 }
  0x7a   :  { %v316_v5 = vpop.permute.xlu0 %315  ;;  %v469_v10 = vpop.permute.xlu1 %468 }
  0x7b   :  { %677 = vmatpush3.msra.mxu0 %v316_v5 }
  0x7c   :  { %686 = vmatprep.subr.mxu0 %v700_v0 }
  0x7e   :  { %v393_v6 = vpop.permute.xlu0 %392  ;;  %v545_v13 = vpop.permute.xlu1 %544 }
  0x7f   :  { %682 = vmatpush3.msra.mxu1 %v393_v6 }
  0x80   :  { %691 = vmatprep.subr.mxu1 %v700_v0 }
  0xd8   :  { %v82_v14 = vpop.f32.mrb[0].mxu0  ;;  %v155_v15 = vpop.f32.mrb[0].mxu1 }
  0xd9   :  { %v311_v16 = vmul.f32 %v310_v12, %v82_v14  ;;  %v312_v17 = vmul.f32 %v310_v12, %v155_v15  ;;  %v660_v18 = vpop.f32.mrb[1].mxu0  ;;  %v665_v19 = vpop.f32.mrb[1].mxu1 }
  0xdb   :  { %679 = vmatmul.mubr.msk.f32.vlgmr.msra.gmra.mrb[4].mxu0 %vm318_vm3, %v311_v16  ;;  %684 = vmatmul.mubr.msk.f32.vlgmr.msra.gmra.mrb[4].mxu1 %vm318_vm3, %v312_v17 }
  0xdc   :  { %687 = vmatpush3.msra.mxu0 %v469_v10  ;;  %v228_v20 = vpop.f32.mrb[2].mxu0  ;;  %v301_v21 = vpop.f32.mrb[2].mxu1  ;;  %692 = vmatpush3.msra.mxu1 %v545_v13 }
  0xdd   :  { %v313_v22 = vmul.f32 %v310_v12, %v228_v20  ;;  %v314_v23 = vmul.f32 %v310_v12, %v301_v21  ;;  %v670_v24 = vpop.f32.mrb[3].mxu0  ;;  %v675_v25 = vpop.f32.mrb[3].mxu1  ;;  %688 = vmatprep.mubr.msk.f32.mxu0 %vm701_vm1, %v700_v0  ;;  %693 = vmatprep.mubr.msk.f32.mxu1 %vm701_vm1, %v700_v0 }
  0xdf   :  { %689 = vmatmul.mubr.msk.f32.vlgmr.msra.gmra.mrb[6].mxu0 %vm318_vm3, %v313_v22  ;;  %694 = vmatmul.mubr.msk.f32.vlgmr.msra.gmra.mrb[6].mxu1 %vm318_vm3, %v314_v23 }
 0x1ae   :  { %v388_v26 = vpop.f32.mrb[4].mxu0  ;;  %v464_v27 = vpop.f32.mrb[4].mxu1 }
 0x1af   :  { %620 = vst.msk [vmem:[%s779_s1] sm:$0xff] %vm12_vm0, %v388_v26  ;;  %621 = vst.msk [vmem:[%s779_s1 + $0x8] sm:$0xff] %vm12_vm0, %v464_v27  ;;  %v680_v28 = vpop.f32.mrb[5].mxu0  ;;  %v685_v29 = vpop.f32.mrb[5].mxu1 }
 0x1b2   :  { %v540_v30 = vpop.f32.mrb[6].mxu0  ;;  %v616_v31 = vpop.f32.mrb[6].mxu1 }
 0x1b3   :  { %622 = vst.msk [vmem:[%s779_s1 + $0x10] sm:$0xff] %vm12_vm0, %v540_v30  ;;  %623 = vst.msk [vmem:[%s779_s1 + $0x18] sm:$0xff] %vm12_vm0, %v616_v31  ;;  %v690_v32 = vpop.f32.mrb[7].mxu0  ;;  %v695_v33 = vpop.f32.mrb[7].mxu1 }

// kernel: genia_reformer2_forward.5
= control target key start
LH: loop header
LB: loop body
LE: loop exit
PB: predicated region body
PF: predicated region fallthrough
CT: control target
= control target key end

     0   :  { %s1449_s0 = inlined_call_operand.vmem [shape: f32[32,16], index: 0, kind: input, shape index: {}]   ;;  %s1450_s1 = inlined_call_operand.vmem [shape: f32[32,16], index: 1, kind: input, shape index: {}]   ;;  %s1451_s2 = inlined_call_operand.vmem [shape: f32[32,16], index: 2, kind: input, shape index: {}]   ;;  %s1452_s3 = inlined_call_operand.vmem [shape: f32[16,16], index: 3, kind: input, shape index: {}]   ;;  %s1453_s4 = inlined_call_operand.vmem [shape: f32[1,16], index: 4, kind: input, shape index: {}]   ;;  %s1454_s5 = inlined_call_operand.vmem [shape: f32[1,16], index: 5, kind: input, shape index: {}]   ;;  %s1455_s6 = inlined_call_operand.vmem [shape: f32[1,16], index: 6, kind: input, shape index: {}]   ;;  %s1456_s7 = inlined_call_operand.vmem [shape: f32[16,64], index: 7, kind: input, shape index: {}]   ;;  %s1457_s8 = inlined_call_operand.vmem [shape: f32[1,64], index: 8, kind: input, shape index: {}]   ;;  %s1458_s9 = inlined_call_operand.vmem [shape: f32[64,16], index: 9, kind: input, shape index: {}]   ;;  %s1459_s10 = inlined_call_operand.vmem [shape: f32[1,16], index: 10, kind: input, shape index: {}]   ;;  %s1460_s11 = inlined_call_operand.vmem [shape: f32[1,16], index: 11, kind: input, shape index: {}]   ;;  %s1461_s12 = inlined_call_operand.vmem [shape: f32[1,16], index: 12, kind: input, shape index: {}]   ;;  %s1462_s13 = inlined_call_operand.vmem [shape: f32[16,16], index: 13, kind: input, shape index: {}]   ;;  %s1463_s14 = inlined_call_operand.vmem [shape: f32[16,16], index: 14, kind: input, shape index: {}]   ;;  %s1464_s15 = inlined_call_operand.vmem [shape: f32[1,16], index: 15, kind: input, shape index: {}]   ;;  %s1465_s16 = inlined_call_operand.vmem [shape: f32[16,16], index: 16, kind: input, shape index: {}]   ;;  %s1466_s17 = inlined_call_operand.vmem [shape: f32[1,16], index: 17, kind: input, shape index: {}]   ;;  %s1467_s18 = inlined_call_operand.hbm [shape: f32[32,16], index: 18, kind: output, shape index: {}]  }
   0x1   :  { %1471 = sst [smem:[#allocation5_spill]] %s1449_s0 }
   0x2   :  { %1472 = sst [smem:[#allocation6_spill]] %s1450_s1 }
   0x3   :  { %1473 = sst [smem:[#allocation7_spill]] %s1451_s2 }
   0x4   :  { %v64_v0 = vld [vmem:[%s1452_s3] sm:$0xff]  ;;  %v65_v1 = vld [vmem:[%s1452_s3 + $0x8] sm:$0xff]  ;;  %s1474_s1 = sld [smem:[#allocation5_spill]]  ;;  %vm73_vm0 = vcmask 130048  }
   0x5   :  { %v1065_v3 = vpack.c.bf16 %v65_v1, %v64_v0 }
   0xa   :  { %v60_v2 = vld [vmem:[%s1474_s1] sm:$0xff] }
   0xb   :  { %997 = vmatprep.mubr.msk.f32.mxu0 %vm73_vm0, %v60_v2 }
   0xc   :  { %23 = vsyncpa [#allocation3], 0  ;;  %1066 = vmatprep.subr.bf16.mxu0 %v1065_v3  ;;  %v61_v4 = vld [vmem:[%s1474_s1 + $0x8] sm:$0xff]  ;;  %v62_v5 = vld [vmem:[%s1474_s1 + $0x10] sm:$0xff]  ;;  %s1475_s28 = sld [smem:[#allocation6_spill]]  ;;  %vm379_vm1 = vcmask 523264  }
   0xd   :  { %1068 = vmatpush3.bf16.msra.mxu0 %v1065_v3  ;;  %v63_v6 = vld [vmem:[%s1474_s1 + $0x18] sm:$0xff]  ;;  %v914_v7 = vld [vmem:[%s1453_s4] ss:$0 sm:$0xff]  ;;  %v255_v49 = vld [vmem:[%s1456_s7 + $0x8] sm:$0xff]  ;;  %s1476_s26 = sld [smem:[#allocation7_spill]] }
   0xe   :  { %v254_v48 = vld [vmem:[%s1456_s7] sm:$0xff]  ;;  %v365_v52 = vld [vmem:[%s1458_s9 + $0x8] sm:$0xff]  ;;  %v366_v53 = vld [vmem:[%s1458_s9 + $0x10] sm:$0xff] }
   0xf   :  { %v1069_v50 = vpack.c.bf16 %v255_v49, %v254_v48  ;;  %v364_v51 = vld [vmem:[%s1458_s9] sm:$0xff]  ;;  %v367_v55 = vld [vmem:[%s1458_s9 + $0x18] sm:$0xff]  ;;  %v369_v58 = vld [vmem:[%s1458_s9 + $0x28] sm:$0xff] }
  0x10   :  { %998 = vmatmul.mubr.msk.f32.vlgmr.msra.gmra.mrb[0].mxu0 %vm73_vm0, %v61_v4  ;;  %v1073_v54 = vpack.c.bf16 %v365_v52, %v364_v51  ;;  %v1077_v56 = vpack.c.bf16 %v367_v55, %v366_v53  ;;  %v368_v57 = vld [vmem:[%s1458_s9 + $0x20] sm:$0xff] }
  0x11   :  { %1000 = vmatprep.mubr.msk.f32.mxu0 %vm73_vm0, %v62_v5  ;;  %1070 = vmatprep.subr.bf16.mxu1 %v1069_v50  ;;  %v1081_v59 = vpack.c.bf16 %v369_v58, %v368_v57 }
  0x12   :  { %v171_v10 = vld [vmem:[%s1475_s28] sm:$0xff]  ;;  %v172_v13 = vld [vmem:[%s1475_s28 + $0x8] sm:$0xff]  ;;  %v173_v17 = vld [vmem:[%s1475_s28 + $0x10] sm:$0xff]  ;;  %1072 = vmatpush3.bf16.msra.mxu1 %v1069_v50  ;;  %1074 = vmatprep.subr.bf16.mxu0 %v1073_v54 }
  0x13   :  { %v174_v22 = vld [vmem:[%s1475_s28 + $0x18] sm:$0xff]  ;;  %1076 = vmatpush3.bf16.msra.mxu0 %v1073_v54 }
  0x14   :  { %1001 = vmatmul.mubr.msk.f32.gmra.mrb[2].mxu0 %vm73_vm0, %v63_v6  ;;  %1078 = vmatprep.subr.bf16.mxu0 %v1077_v56  ;;  %v480_v52 = vld [vmem:[%s1476_s26 + $0x18] sm:$0xff] }
  0x17   :  { %1080 = vmatpush3.bf16.msra.mxu0 %v1077_v56  ;;  %v479_v56 = vld [vmem:[%s1476_s26 + $0x10] sm:$0xff] }
  0x18   :  { %1082 = vmatprep.subr.bf16.mxu0 %v1081_v59 }
  0x1b   :  { %1084 = vmatpush3.bf16.msra.mxu0 %v1081_v59 }
  0xe3   :  { %v999_v8 = vpop.f32.mrb[0].mxu0 }
  0xe4   :  { %v152_v9 = vpop.f32.mrb[1].mxu0  ;;  %v158_v11 = vadd.f32 %v999_v8, %v914_v7 }
  0xe5   :  { %v153_v12 = vadd.f32 %v914_v7, %v152_v9  ;;  %v919_v9 = vld [vmem:[%s1454_s5] ss:$0 sm:$0xff] }
  0xe6   :  { %v176_v21 = vadd.f32 %v172_v13, %v158_v11  ;;  %v920_v11 = vld [vmem:[%s1455_s6] ss:$0 sm:$0xff] }
  0xe7   :  { %v1002_v14 = vpop.f32.mrb[2].mxu0  ;;  %v175_v15 = vadd.f32 %v171_v10, %v153_v12 }
  0xe8   :  { %v162_v16 = vpop.f32.mrb[3].mxu0  ;;  %v168_v18 = vadd.f32 %v1002_v14, %v914_v7  ;;  %v184_v25 = vsel %vm73_vm0, %v176_v21, 0.0 }
  0xe9   :  { %v163_v19 = vadd.f32 %v914_v7, %v162_v16  ;;  %v181_v20 = vsel %vm73_vm0, %v175_v15, 0.0 }
  0xea   :  { %182 = vadd.xlane.f32.xlu0 %v181_v20  ;;  %v178_v26 = vadd.f32 %v174_v22, %v168_v18 }
  0xeb   :  { %v177_v23 = vadd.f32 %v173_v17, %v163_v19 }
  0xec   :  { %v190_v27 = vsel %vm73_vm0, %v178_v26, 0.0 }
  0xed   :  { %v187_v24 = vsel %vm73_vm0, %v177_v23, 0.0 }
  0xee   :  { %188 = vadd.xlane.f32.xlu1 %v187_v24  ;;  %185 = vadd.xlane.f32.xlu0 %v184_v25 }
  0xf2   :  { %191 = vadd.xlane.f32.xlu1 %v190_v27  ;;  %v371_v27 = vld [vmem:[%s1458_s9 + $0x38] sm:$0xff] }
 0x177   :  { %v183_v28 = vpop.xlane.xlu0 %182 }
 0x178   :  { %v194_v29 = vmul.f32 0.0625, %v183_v28 }
 0x17a   :  { %v198_v30 = vsub.f32 %v175_v15, %v194_v29  ;;  %v921_v29 = vld [vmem:[%s1457_s8] ss:$0 sm:$0xff] }
 0x17b   :  { %v189_v31 = vpop.xlane.xlu1 %188  ;;  %v186_v32 = vpop.xlane.xlu0 %185 }
 0x17c   :  { %v196_v33 = vmul.f32 0.0625, %v189_v31  ;;  %v195_v34 = vmul.f32 0.0625, %v186_v32  ;;  %v202_v35 = vmul.f32 %v198_v30, %v198_v30 }
 0x17e   :  { %v200_v36 = vsub.f32 %v177_v23, %v196_v33  ;;  %v199_v37 = vsub.f32 %v176_v21, %v195_v34  ;;  %v206_v38 = vsel %vm73_vm0, %v202_v35, 0.0 }
 0x17f   :  { %v192_v39 = vpop.xlane.xlu1 %191  ;;  %207 = vadd.xlane.f32.xlu0 %v206_v38 }
 0x180   :  { %v197_v40 = vmul.f32 0.0625, %v192_v39  ;;  %v204_v41 = vmul.f32 %v200_v36, %v200_v36  ;;  %v203_v42 = vmul.f32 %v199_v37, %v199_v37 }
 0x182   :  { %v201_v43 = vsub.f32 %v178_v26, %v197_v40  ;;  %v212_v44 = vsel %vm73_vm0, %v204_v41, 0.0  ;;  %v209_v45 = vsel %vm73_vm0, %v203_v42, 0.0  ;;  %v370_v26 = vld [vmem:[%s1458_s9 + $0x30] sm:$0xff]  ;;  %v926_v42 = vld [vmem:[%s1459_s10] ss:$0 sm:$0xff] }
 0x183   :  { %213 = vadd.xlane.f32.xlu0 %v212_v44  ;;  %210 = vadd.xlane.f32.xlu1 %v209_v45  ;;  %v1085_v28 = vpack.c.bf16 %v371_v27, %v370_v26  ;;  %v478_v44 = vld [vmem:[%s1476_s26 + $0x8] sm:$0xff]  ;;  %v559_v26 = vld [vmem:[%s1462_s13] sm:$0xff] }
 0x184   :  { %v205_v46 = vmul.f32 %v201_v43, %v201_v43  ;;  %v560_v27 = vld [vmem:[%s1462_s13 + $0x8] sm:$0xff] }
 0x185   :  { %1086 = vmatprep.subr.bf16.mxu0 %v1085_v28 }
 0x186   :  { %v215_v47 = vsel %vm73_vm0, %v205_v46, 0.0  ;;  %1088 = vmatpush3.bf16.msra.mxu0 %v1085_v28  ;;  %v1093_v28 = vpack.c.bf16 %v560_v27, %v559_v26 }
 0x187   :  { %216 = vadd.xlane.f32.xlu1 %v215_v47  ;;  %v477_v47 = vld [vmem:[%s1476_s26] sm:$0xff] }
 0x20c   :  { %v208_v60 = vpop.xlane.xlu0 %207 }
 0x20d   :  { %v218_v61 = vmul.f32 0.0625, %v208_v60 }
 0x20f   :  { %v222_v62 = vadd.f32 1e-05, %v218_v61 }
 0x210   :  { %v211_v63 = vpop.xlane.xlu1 %210  ;;  %v214_v0 = vpop.xlane.xlu0 %213 }
 0x211   :  { %1110 = vrsqrt.f32 %v222_v62  ;;  %v219_v1 = vmul.f32 0.0625, %v211_v63  ;;  %v220_v2 = vmul.f32 0.0625, %v214_v0 }
 0x213   :  { %v223_v3 = vadd.f32 1e-05, %v219_v1  ;;  %v224_v4 = vadd.f32 1e-05, %v220_v2 }
 0x214   :  { %v217_v5 = vpop.xlane.xlu1 %216 }
 0x215   :  { %1112 = vrsqrt.f32 %v223_v3  ;;  %v221_v6 = vmul.f32 0.0625, %v217_v5 }
 0x216   :  { %1114 = vrsqrt.f32 %v224_v4 }
 0x217   :  { %v225_v7 = vadd.f32 1e-05, %v221_v6 }
 0x219   :  { %1116 = vrsqrt.f32 %v225_v7 }
 0x21b   :  { %v1111_v8 = vpop.eup %1110 }
 0x21c   :  { %v230_v10 = vmul.f32 %v1111_v8, %v198_v30 }
 0x21e   :  { %v240_v12 = vmul.f32 %v919_v9, %v230_v10 }
 0x21f   :  { %v1113_v13 = vpop.eup %1112 }
 0x220   :  { %v1115_v14 = vpop.eup %1114  ;;  %v1339_v15 = vadd.f32 %v920_v11, %v240_v12  ;;  %v231_v16 = vmul.f32 %v1113_v13, %v199_v37 }
 0x221   :  { %v232_v17 = vmul.f32 %v1115_v14, %v200_v36 }
 0x222   :  { %1007 = vmatprep.mubr.msk.f32.mxu1 %vm73_vm0, %v1339_v15  ;;  %v241_v18 = vmul.f32 %v919_v9, %v231_v16 }
 0x223   :  { %v1117_v19 = vpop.eup %1116  ;;  %v242_v20 = vmul.f32 %v919_v9, %v232_v17 }
 0x224   :  { %v1343_v21 = vadd.f32 %v920_v11, %v241_v18  ;;  %v233_v22 = vmul.f32 %v1117_v19, %v201_v43 }
 0x225   :  { %v1345_v23 = vadd.f32 %v920_v11, %v242_v20  ;;  %v561_v20 = vld [vmem:[%s1463_s14] sm:$0xff] }
 0x226   :  { %1008 = vmatmul.mubr.msk.f32.vlgmr.msra.gmra.mrb[0].mxu1 %vm73_vm0, %v1343_v21  ;;  %v243_v24 = vmul.f32 %v919_v9, %v233_v22  ;;  %v562_v22 = vld [vmem:[%s1463_s14 + $0x8] sm:$0xff] }
 0x227   :  { %1010 = vmatprep.mubr.msk.f32.mxu1 %vm73_vm0, %v1345_v23 }
 0x228   :  { %v1351_v25 = vadd.f32 %v920_v11, %v243_v24  ;;  %v1089_v24 = vpack.c.bf16 %v562_v22, %v561_v20 }
 0x22a   :  { %1011 = vmatmul.mubr.msk.f32.gmra.mrb[2].mxu1 %vm73_vm0, %v1351_v25  ;;  %1090 = vmatprep.subr.bf16.mxu1 %v1089_v24 }
 0x22b   :  { %1092 = vmatpush3.bf16.msra.mxu1 %v1089_v24 }
 0x22c   :  { %1094 = vmatprep.subr.bf16.mxu1 %v1093_v28 }
 0x2f9   :  { %v1009_v30 = vpop.f32.mrb[0].mxu1 }
 0x2fa   :  { %v347_v31 = vadd.f32 %v1009_v30, %v921_v29  ;;  %v341_v32 = vpop.f32.mrb[1].mxu1 }
 0x2fb   :  { %v342_v33 = vadd.f32 %v921_v29, %v341_v32 }
 0x2fc   :  { %v361_v36 = vmax.f32 %v347_v31, 0.0 }
 0x2fd   :  { %v360_v34 = vmax.f32 %v342_v33, 0.0  ;;  %v1012_v35 = vpop.f32.mrb[2].mxu1 }
 0x2fe   :  { %v357_v37 = vadd.f32 %v1012_v35, %v921_v29  ;;  %v351_v38 = vpop.f32.mrb[3].mxu1 }
 0x2ff   :  { %v352_v39 = vadd.f32 %v921_v29, %v351_v38  ;;  %1029 = vmatprep.mubr.msk.f32.mxu0 %vm379_vm1, %v360_v34 }
 0x300   :  { %1030 = vmatmul.mubr.msk.f32.vlgmr.msra.gmra.mrb[4].mxu0 %vm379_vm1, %v361_v36  ;;  %v363_v41 = vmax.f32 %v357_v37, 0.0 }
 0x301   :  { %v362_v40 = vmax.f32 %v352_v39, 0.0 }
 0x303   :  { %1032 = vmatprep.mubr.msk.f32.mxu0 %vm379_vm1, %v362_v40 }
 0x304   :  { %1033 = vmatmul.mubr.msk.f32.gmra.mrb[6].mxu0 %vm379_vm1, %v363_v41 }
 0x3d3   :  { %v1031_v43 = vpop.f32.mrb[4].mxu0 }
 0x3d4   :  { %v464_v45 = vadd.f32 %v1031_v43, %v926_v42  ;;  %v458_v46 = vpop.f32.mrb[5].mxu0 }
 0x3d5   :  { %v459_v48 = vadd.f32 %v926_v42, %v458_v46  ;;  %v932_v46 = vld [vmem:[%s1461_s12] ss:$0 sm:$0xff] }
 0x3d6   :  { %v482_v49 = vadd.f32 %v478_v44, %v464_v45 }
 0x3d7   :  { %v1034_v50 = vpop.f32.mrb[6].mxu0  ;;  %v481_v51 = vadd.f32 %v477_v47, %v459_v48 }
 0x3d8   :  { %v474_v53 = vadd.f32 %v1034_v50, %v926_v42  ;;  %v468_v54 = vpop.f32.mrb[7].mxu0  ;;  %v490_v55 = vsel %vm73_vm0, %v482_v49, 0.0 }
 0x3d9   :  { %v469_v57 = vadd.f32 %v926_v42, %v468_v54  ;;  %491 = vadd.xlane.f32.xlu1 %v490_v55  ;;  %v487_v58 = vsel %vm73_vm0, %v481_v51, 0.0  ;;  %v931_v42 = vld [vmem:[%s1460_s11] ss:$0 sm:$0xff] }
 0x3da   :  { %488 = vadd.xlane.f32.xlu0 %v487_v58  ;;  %v484_v59 = vadd.f32 %v480_v52, %v474_v53 }
 0x3db   :  { %v483_v60 = vadd.f32 %v479_v56, %v469_v57 }
 0x3dc   :  { %v496_v61 = vsel %vm73_vm0, %v484_v59, 0.0 }
 0x3dd   :  { %497 = vadd.xlane.f32.xlu1 %v496_v61  ;;  %v493_v62 = vsel %vm73_vm0, %v483_v60, 0.0 }
 0x3de   :  { %494 = vadd.xlane.f32.xlu0 %v493_v62 }
 0x466   :  { %v492_v63 = vpop.xlane.xlu1 %491 }
 0x467   :  { %v500_v0 = vmul.f32 0.0625, %v492_v63  ;;  %v489_v1 = vpop.xlane.xlu0 %488 }
 0x468   :  { %v499_v2 = vmul.f32 0.0625, %v489_v1 }
 0x469   :  { %v504_v3 = vsub.f32 %v482_v49, %v500_v0 }
 0x46a   :  { %v503_v4 = vsub.f32 %v481_v51, %v499_v2  ;;  %v498_v5 = vpop.xlane.xlu1 %497 }
 0x46b   :  { %v502_v6 = vmul.f32 0.0625, %v498_v5  ;;  %v495_v7 = vpop.xlane.xlu0 %494  ;;  %v508_v8 = vmul.f32 %v504_v3, %v504_v3 }
 0x46c   :  { %v501_v9 = vmul.f32 0.0625, %v495_v7  ;;  %v507_v10 = vmul.f32 %v503_v4, %v503_v4  ;;  %v942_v7 = vld [vmem:[%s1466_s17] ss:$0 sm:$0xff]  ;;  %s1166_s17 = smov [#allocation2]  }
 0x46d   :  { %v506_v11 = vsub.f32 %v484_v59, %v502_v6  ;;  %v514_v12 = vsel %vm73_vm0, %v508_v8, 0.0  ;;  %v760_v59 = vld [vmem:[%s1465_s16] sm:$0xff]  ;;  %s903_s8 = sshll.u32 %s1166_s17, 4  ;;  %s904_s8 = int_to_ptr.vmem [resolvable:$true] %s903_s8 }
 0x46e   :  { %v505_v13 = vsub.f32 %v483_v60, %v501_v9  ;;  %515 = vadd.xlane.f32.xlu1 %v514_v12  ;;  %v511_v14 = vsel %vm73_vm0, %v507_v10, 0.0  ;;  %v761_v60 = vld [vmem:[%s1465_s16 + $0x8] sm:$0xff]  ;;  %s1142_s25 = scalar_lea.vmem %s904_s8, 512  ;;  %p1147_p1 = scmp.lt.s32.totalorder %s904_s8, %s904_s8 }
 0x46f   :  { %512 = vadd.xlane.f32.xlu0 %v511_v14  ;;  %v510_v16 = vmul.f32 %v506_v11, %v506_v11  ;;  %v1097_v61 = vpack.c.bf16 %v761_v60, %v760_v59  ;;  %p1143_p0 = scmp.ne.s32.totalorder %s904_s8, %s1142_s25  ;;  %p1148_p2 = scmp.lt.s32.totalorder %s1142_s25, %s1142_s25 }
 0x470   :  { %v509_v17 = vmul.f32 %v505_v13, %v505_v13 }
 0x471   :  { %v520_v18 = vsel %vm73_vm0, %v510_v16, 0.0  ;;  %1098 = vmatprep.subr.bf16.mxu0 %v1097_v61  ;;  %p1149_p3 = por %p1148_p2, %p1147_p1 }
 0x472   :  { %521 = vadd.xlane.f32.xlu1 %v520_v18  ;;  %v517_v19 = vsel %vm73_vm0, %v509_v17, 0.0  ;;  %1100 = vmatpush3.bf16.msra.mxu0 %v1097_v61 }
 0x473   :  { %518 = vadd.xlane.f32.xlu0 %v517_v19  ;;  %p1150_p4 = pnand %p1149_p3, %p1143_p0 }
 0x4fb   :  { %v516_v29 = vpop.xlane.xlu1 %515 }
 0x4fc   :  { %v524_v30 = vmul.f32 0.0625, %v516_v29  ;;  %v513_v31 = vpop.xlane.xlu0 %512 }
 0x4fd   :  { %v523_v32 = vmul.f32 0.0625, %v513_v31 }
 0x4fe   :  { %v528_v33 = vadd.f32 1e-05, %v524_v30 }
 0x4ff   :  { %v527_v34 = vadd.f32 1e-05, %v523_v32  ;;  %v522_v35 = vpop.xlane.xlu1 %521 }
 0x500   :  { %1118 = vrsqrt.f32 %v528_v33  ;;  %v526_v36 = vmul.f32 0.0625, %v522_v35  ;;  %v519_v37 = vpop.xlane.xlu0 %518 }
 0x501   :  { %1120 = vrsqrt.f32 %v527_v34  ;;  %v525_v38 = vmul.f32 0.0625, %v519_v37 }
 0x502   :  { %v530_v39 = vadd.f32 1e-05, %v526_v36 }
 0x503   :  { %v529_v40 = vadd.f32 1e-05, %v525_v38 }
 0x504   :  { %1122 = vrsqrt.f32 %v530_v39 }
 0x505   :  { %1124 = vrsqrt.f32 %v529_v40 }
 0x50a   :  { %v1119_v41 = vpop.eup %1118 }
 0x50b   :  { %v1121_v43 = vpop.eup %1120  ;;  %v536_v44 = vmul.f32 %v1119_v41, %v504_v3 }
 0x50c   :  { %v535_v45 = vmul.f32 %v1121_v43, %v503_v4 }
 0x50d   :  { %v546_v47 = vmul.f32 %v931_v42, %v536_v44 }
 0x50e   :  { %v1123_v48 = vpop.eup %1122  ;;  %v545_v49 = vmul.f32 %v931_v42, %v535_v45 }
 0x50f   :  { %v1125_v50 = vpop.eup %1124  ;;  %v538_v51 = vmul.f32 %v1123_v48, %v506_v11  ;;  %v556_v54 = vadd.f32 %v932_v46, %v546_v47 }
 0x510   :  { %v555_v52 = vadd.f32 %v932_v46, %v545_v49  ;;  %v537_v53 = vmul.f32 %v1125_v50, %v505_v13 }
 0x511   :  { %v548_v55 = vmul.f32 %v931_v42, %v538_v51 }
 0x512   :  { %1039 = vmatprep.mubr.msk.f32.mxu1 %vm73_vm0, %v555_v52  ;;  %v547_v56 = vmul.f32 %v931_v42, %v537_v53 }
 0x513   :  { %1040 = vmatmul.mubr.msk.f32.vlgmr.msra.gmra.mrb[4].mxu1 %vm73_vm0, %v556_v54  ;;  %v558_v58 = vadd.f32 %v932_v46, %v548_v55 }
 0x514   :  { %1096 = vmatpush3.bf16.msra.mxu1 %v1093_v28  ;;  %v557_v57 = vadd.f32 %v932_v46, %v547_v56 }
 0x515   :  { %1101 = vmatprep.subr.bf16.mxu1 %v1097_v61 }
 0x516   :  { %1042 = vmatprep.mubr.msk.f32.mxu1 %vm73_vm0, %v557_v57 }
 0x517   :  { %1043 = vmatmul.mubr.msk.f32.gmra.mrb[6].mxu1 %vm73_vm0, %v558_v58 }
 0x518   :  { %1049 = vmatprep.mubr.msk.f32.mxu1 %vm73_vm0, %v1339_v15  ;;  %v941_v15 = vld [vmem:[%s1464_s15] ss:$0 sm:$0xff] }
 0x51b   :  { %1050 = vmatmul.mubr.msk.f32.vlgmr.msra.gmra.mrb[4].mxu1 %vm73_vm0, %v1343_v21 }
 0x51c   :  { %1052 = vmatprep.mubr.msk.f32.mxu1 %vm73_vm0, %v1345_v23  ;;  %1102 = vmatpush3.bf16.msra.mxu1 %v1097_v61 }
 0x51f   :  { %1053 = vmatmul.mubr.msk.f32.gmra.mrb[6].mxu1 %vm73_vm0, %v1351_v25 }
 0x5ee   :  { %v1051_v21 = vpop.f32.mrb[4].mxu1 }
 0x5ef   :  { %v753_v23 = vadd.f32 %v1051_v21, %v941_v15  ;;  %v726_v25 = vpop.f32.mrb[5].mxu1 }
 0x5f0   :  { %v752_v62 = vadd.f32 %v941_v15, %v726_v25 }
 0x5f1   :  { %v757_v1 = vmax.f32 %v753_v23, 0.0 }
 0x5f2   :  { %v756_v63 = vmax.f32 %v752_v62, 0.0  ;;  %v1054_v0 = vpop.f32.mrb[6].mxu1 }
 0x5f3   :  { %v755_v2 = vadd.f32 %v1054_v0, %v941_v15  ;;  %v736_v3 = vpop.f32.mrb[7].mxu1 }
 0x5f4   :  { %v754_v4 = vadd.f32 %v941_v15, %v736_v3  ;;  %1059 = vmatprep.mubr.msk.f32.mxu0 %vm73_vm0, %v756_v63 }
 0x5f5   :  { %1060 = vmatmul.mubr.msk.f32.vlgmr.msra.gmra.mrb[8].mxu0 %vm73_vm0, %v757_v1  ;;  %v759_v6 = vmax.f32 %v755_v2, 0.0 }
 0x5f6   :  { %v758_v5 = vmax.f32 %v754_v4, 0.0 }
 0x5f8   :  { %1062 = vmatprep.mubr.msk.f32.mxu1 %vm73_vm0, %v758_v5 }
 0x5f9   :  { %1063 = vmatmul.mubr.msk.f32.vlgmr.msra.gmra.mrb[8].mxu1 %vm73_vm0, %v759_v6 }
 0x6c8   :  { %v1061_v8 = vpop.f32.mrb[8].mxu0 }
 0x6c9   :  { %v853_v9 = vadd.f32 %v1061_v8, %v942_v7  ;;  %v847_v10 = vpop.f32.mrb[9].mxu0 }
 0x6ca   :  { %v848_v11 = vadd.f32 %v942_v7, %v847_v10 }
 0x6cb   :  { %v867_v12 = vmax.f32 %v853_v9, 0.0 }
 0x6cc   :  { %v866_v13 = vmax.f32 %v848_v11, 0.0  ;;  %v1064_v14 = vpop.f32.mrb[8].mxu1 }
 0x6cd   :  { %v948_v16 = vmul.f32 -1.442695, %v867_v12  ;;  %v863_v17 = vadd.f32 %v1064_v14, %v942_v7  ;;  %v857_v18 = vpop.f32.mrb[9].mxu1 }
 0x6ce   :  { %v947_v19 = vmul.f32 -1.442695, %v866_v13  ;;  %v858_v20 = vadd.f32 %v942_v7, %v857_v18 }
 0x6cf   :  { %1126 = vpow2.f32 %v948_v16  ;;  %v869_v22 = vmax.f32 %v863_v17, 0.0 }
 0x6d0   :  { %1128 = vpow2.f32 %v947_v19  ;;  %v868_v24 = vmax.f32 %v858_v20, 0.0 }
 0x6d1   :  { %v950_v26 = vmul.f32 -1.442695, %v869_v22 }
 0x6d2   :  { %v949_v27 = vmul.f32 -1.442695, %v868_v24 }
 0x6d3   :  { %1130 = vpow2.f32 %v950_v26 }
 0x6d4   :  { %1132 = vpow2.f32 %v949_v27 }
 0x6d9   :  { %v1127_v28 = vpop.eup %1126 }
 0x6da   :  { %v1129_v29 = vpop.eup %1128  ;;  %v883_v30 = vadd.f32 1.0, %v1127_v28 }
 0x6db   :  { %v882_v31 = vadd.f32 1.0, %v1129_v29 }
 0x6dc   :  { %1134 = vrcp.f32 %v883_v30 }
 0x6dd   :  { %v1131_v32 = vpop.eup %1130  ;;  %1136 = vrcp.f32 %v882_v31 }
 0x6de   :  { %v1133_v33 = vpop.eup %1132  ;;  %v885_v34 = vadd.f32 1.0, %v1131_v32 }
 0x6df   :  { %v884_v35 = vadd.f32 1.0, %v1133_v33 }
 0x6e0   :  { %1138 = vrcp.f32 %v885_v34 }
 0x6e1   :  { %1140 = vrcp.f32 %v884_v35 }
 0x6e6   :  { %v1135_v36 = vpop.eup %1134 }
 0x6e7   :  { %v1137_v37 = vpop.eup %1136  ;;  %895 = vst.msk [vmem:[#allocation2 + $0x8] sm:$0xff] %vm73_vm0, %v1135_v36 }
 0x6e8   :  { %894 = vst.msk [vmem:[#allocation2] sm:$0xff] %vm73_vm0, %v1137_v37 }
 0x6ea   :  { %v1139_v38 = vpop.eup %1138 }
 0x6eb   :  { %v1141_v39 = vpop.eup %1140  ;;  %897 = vst.msk [vmem:[#allocation2 + $0x18] sm:$0xff] %vm73_vm0, %v1139_v38 }
 0x6ec   :  { %896 = vst.msk [vmem:[#allocation2 + $0x10] sm:$0xff] %vm73_vm0, %v1141_v39 }
 0x6ed   :  { %1153 = shalt.err (!%p1150_p4)
}
 0x6ee   :  { %s1154_s28 = scalar_lea.hbm %s1467_s18, 512 }
 0x6ef   :  { %p1155_p5 = scmp.ne.s32.totalorder %s1467_s18, %s1154_s28  ;;  %p1158_p6 = scmp.lt.u32.totalorder %s1154_s28, %s1467_s18 }
 0x6f1   :  { %p1160_p7 = pnand %p1158_p6, %p1155_p5 }
 0x6f3   :  { %1163 = shalt.err (!%p1160_p7)
}
 0x6f4   :  { %s1167_s0 = smov 128   ;;  %s1168_s19 = smov 8  }
 0x6f5   :  { %909 = dma.vmem_to_hbm [thread:$0]  %s904_s8, 512, %s1467_s18, [#allocation3], %s1167_s0, %s1167_s0, %s1168_s19  }
 0x6f6   :  { %1164 = dma.done.wait [#allocation3], 512  }
 0x6f7   :  { %1165 = vsyncadd [#allocation3], 4294966784 }
 0x6f8   :  { %913 = vsyncpa [#allocation3], 1 }

</bundles_post_ra>
